<compile_context>
chip_gen: v7x
topology: tpu7x:2x2x1
jax: 0.10.0
libtpu: 0.0.40
codegen_flags: <defaults>
</compile_context>

<pallas_src>
import functools

import jax
import jax.numpy as jnp
from jax import lax
from jax.experimental import pallas as pl
from jax.experimental.pallas import tpu as pltpu

EPS = 1e-5
NEG_SLOPE = 0.3

VMEM_LIMIT = 32 * 1024 * 1024      # scoped VMEM request (safe on v5e/v6e/v7x)
VMEM_BUDGET = 12 * 1024 * 1024     # per-call working-set cap used to size tiles
FUSED_MAX_BYTES = 6 * 1024 * 1024  # total working-set threshold for the fused path
FUSED_MAX_ACC = 2 * 1024 * 1024    # f32 (Mp, Cp) conv-result threshold for fused path


# ----------------------------------------------------------------------------- kernels

def _fused_kernel(a_ref, w_ref, g_ref, b_ref, o_ref, *, m_total, cout):
    """Small-M fast path: conv + batch stats + BN + LeakyReLU in one grid step.

    a_ref: (Mp, K) bf16 im2col; w_ref: (K, Cp) bf16; g_ref/b_ref: (1, Cp) f32.
    o_ref: (Cout, Mp) f32 — transposed, lane-dense store.
    Zero-padded A rows produce zero conv rows and therefore contribute 0 to the sums;
    dividing by the true row count m_total keeps the statistics exact.
    """
    z = jnp.dot(a_ref[...], w_ref[...], preferred_element_type=jnp.float32)
    inv_m = 1.0 / m_total
    mean = jnp.sum(z, axis=0, keepdims=True) * inv_m
    var = jnp.maximum(jnp.sum(z * z, axis=0, keepdims=True) * inv_m - mean * mean, 0.0)
    scale = lax.rsqrt(var + EPS) * g_ref[...]
    shift = b_ref[...] - mean * scale
    y = z * scale + shift
    y = jnp.where(y > 0, y, NEG_SLOPE * y)                 # LeakyReLU(0.3)
    o_ref[...] = jnp.transpose(y)[:cout, :]                # (Cout, Mp) lane-dense


def _stats_kernel(a_ref, w_ref, sum_ref, sq_ref):
    """Pass 1: per-channel sum / sum-of-squares of the (bias-free) conv output.

    Grid is (n_split, tiles_per_split): leading axis is 'parallel' (v7x dual-TC),
    trailing axis is the 'arbitrary' reduction axis.  sum_ref/sq_ref are the per-core
    resident (1, 1, Cp) accumulators.
    """
    @pl.when(pl.program_id(1) == 0)
    def _init():
        sum_ref[...] = jnp.zeros_like(sum_ref)
        sq_ref[...] = jnp.zeros_like(sq_ref)

    raw = jnp.dot(a_ref[...], w_ref[...], preferred_element_type=jnp.float32)
    sum_ref[...] += jnp.sum(raw, axis=0, keepdims=True)[None]
    sq_ref[...] += jnp.sum(raw * raw, axis=0, keepdims=True)[None]


def _norm_act_kernel(a_ref, w_ref, scale_ref, shift_ref, o_ref, *, cout):
    """Pass 2: recompute conv tile, apply folded BN affine + LeakyReLU, transposed store."""
    raw = jnp.dot(a_ref[...], w_ref[...], preferred_element_type=jnp.float32)
    y = raw * scale_ref[...] + shift_ref[...]
    y = jnp.where(y > 0, y, NEG_SLOPE * y)
    o_ref[...] = jnp.transpose(y)[:cout, :]                # (Cout, TM) lane-dense


# ----------------------------------------------------------------------------- wrapper

def _im2col(x_nhwc, kh, kw, pad, stride):
    # x_nhwc: [N, H, W, Cin] -> patches [N, Ho, Wo, kh*kw*Cin] (patch order: kh, kw, cin)
    n, h, w, cin = x_nhwc.shape
    xp = jnp.pad(x_nhwc, ((0, 0), (pad, pad), (pad, pad), (0, 0)))
    ho = (h + 2 * pad - kh) // stride + 1
    wo = (w + 2 * pad - kw) // stride + 1
    cols = []
    for i in range(kh):
        for j in range(kw):
            sl = xp[:, i:i + (ho - 1) * stride + 1:stride,
                       j:j + (wo - 1) * stride + 1:stride, :]
            cols.append(sl)
    return jnp.concatenate(cols, axis=-1), ho, wo


@functools.partial(jax.jit, static_argnames=("pad", "stride", "tile_m", "force_path"))
def conv_block_forward(x_nchw, weight, bias, gamma, beta, *, pad=1, stride=1,
                       tile_m=512, force_path=None):
    """Conv2d + BatchNorm2d(train-mode batch stats) + LeakyReLU(0.3).

    x_nchw: [N, Cin, H, W]; weight: [Cout, Cin, Kh, Kw]; bias/gamma/beta: [Cout].
    Returns [N, Cout, Ho, Wo] float32.
    Note: the conv bias cancels exactly under train-mode BatchNorm (a per-channel
    constant shifts the batch mean by the same amount), so it is not applied.
    """
    del bias
    n, cin, h, w = x_nchw.shape
    cout, _, kh, kw = weight.shape

    # bf16 operands for the MXU; accumulation / stats / activation stay f32.
    x_nhwc = jnp.transpose(x_nchw, (0, 2, 3, 1)).astype(jnp.bfloat16)
    patches, ho, wo = _im2col(x_nhwc, kh, kw, pad, stride)
    m = n * ho * wo
    k = kh * kw * cin
    a = patches.reshape(m, k)                              # K kept natural (no zero-pad)

    # Weight [Cout, Cin, Kh, Kw] -> [Kh, Kw, Cin, Cout] -> [K, Cout]; pad Cout lanes only.
    w_mat = jnp.transpose(weight, (2, 3, 1, 0)).reshape(k, cout).astype(jnp.bfloat16)
    cp = ((cout + 127) // 128) * 128
    w_p = jnp.pad(w_mat, ((0, 0), (0, cp - cout)))
    g_p = jnp.pad(gamma.astype(jnp.float32).reshape(1, cout), ((0, 0), (0, cp - cout)))
    be_p = jnp.pad(beta.astype(jnp.float32).reshape(1, cout), ((0, 0), (0, cp - cout)))

    # ---------------- fused single-call fast path (small M) ----------------
    mp_f = max(128, ((m + 127) // 128) * 128)
    fused_bytes = mp_f * k * 2 + k * cp * 2 + mp_f * cp * 4 + cout * mp_f * 4
    use_fused = (force_path == "fused") or (
        force_path is None
        and fused_bytes <= FUSED_MAX_BYTES
        and mp_f * cp * 4 <= FUSED_MAX_ACC)

    if use_fused:
        a_f = jnp.pad(a, ((0, mp_f - m), (0, 0))) if mp_f != m else a
        out_t = pl.pallas_call(
            functools.partial(_fused_kernel, m_total=m, cout=cout),
            out_shape=jax.ShapeDtypeStruct((cout, mp_f), jnp.float32),
            grid=(1,),
            in_specs=[pl.BlockSpec((mp_f, k), lambda i: (0, 0)),
                      pl.BlockSpec((k, cp), lambda i: (0, 0)),
                      pl.BlockSpec((1, cp), lambda i: (0, 0)),
                      pl.BlockSpec((1, cp), lambda i: (0, 0))],
            out_specs=pl.BlockSpec((cout, mp_f), lambda i: (0, 0)),
            compiler_params=pltpu.CompilerParams(
                dimension_semantics=("arbitrary",),
                vmem_limit_bytes=VMEM_LIMIT),
        )(a_f, w_p, g_p, be_p)
        out_cm = out_t[:, :m]                              # (Cout, M)
        return jnp.transpose(out_cm.reshape(cout, n, ho, wo), (1, 0, 2, 3))

    # ---------------- general two-pass path ----------------
    # M tile: multiple of 128 (lane-dense transposed stores), capped for VMEM.
    tm = min(tile_m, m)
    tm = max(128, ((tm + 127) // 128) * 128)

    def _working_set(tm_):
        return (2 * tm_ * k * 2        # A tile, double-buffered bf16
                + 2 * k * cp * 2       # W (resident, margin for 2 buffers)
                + tm_ * cp * 4         # live f32 matmul result
                + 2 * cout * tm_ * 4   # output tiles
                + (1 << 16))

    while tm > 128 and _working_set(tm) > VMEM_BUDGET:
        tm -= 128

    num_tiles = (m + tm - 1) // tm
    n_split = 2 if num_tiles >= 2 else 1                   # v7x dual-TC stats split
    tiles_per_split = (num_tiles + n_split - 1) // n_split
    total_tiles = n_split * tiles_per_split
    mp = total_tiles * tm
    a_p = jnp.pad(a, ((0, mp - m), (0, 0))) if mp != m else a

    # Pass 1: per-core partial per-channel sum / sum-of-squares of the raw conv output.
    sum_o, sq_o = pl.pallas_call(
        _stats_kernel,
        out_shape=(jax.ShapeDtypeStruct((n_split, 1, cp), jnp.float32),
                   jax.ShapeDtypeStruct((n_split, 1, cp), jnp.float32)),
        grid=(n_split, tiles_per_split),
        in_specs=[pl.BlockSpec((tm, k), lambda c, t: (c * tiles_per_split + t, 0)),
                  pl.BlockSpec((k, cp), lambda c, t: (0, 0))],
        out_specs=(pl.BlockSpec((1, 1, cp), lambda c, t: (c, 0, 0)),
                   pl.BlockSpec((1, 1, cp), lambda c, t: (c, 0, 0))),
        compiler_params=pltpu.CompilerParams(
            dimension_semantics=("parallel", "arbitrary"),
            vmem_limit_bytes=VMEM_LIMIT),
    )(a_p, w_p)

    # Fold BN affine into per-channel scale/shift (tiny XLA ops between the passes).
    sum_c = jnp.sum(sum_o[:, 0, :], axis=0)
    sq_c = jnp.sum(sq_o[:, 0, :], axis=0)
    inv_m = 1.0 / m
    mean = sum_c * inv_m
    var = jnp.maximum(sq_c * inv_m - mean * mean, 0.0)     # biased variance
    scale = lax.rsqrt(var + EPS) * g_p[0]
    shift = be_p[0] - mean * scale
    scale = scale.reshape(1, cp)
    shift = shift.reshape(1, cp)

    # Pass 2: recompute conv tile, FMA + LeakyReLU, lane-dense (Cout, TM) store.
    out_t = pl.pallas_call(
        functools.partial(_norm_act_kernel, cout=cout),
        out_shape=jax.ShapeDtypeStruct((cout, mp), jnp.float32),
        grid=(total_tiles,),
        in_specs=[pl.BlockSpec((tm, k), lambda i: (i, 0)),
                  pl.BlockSpec((k, cp), lambda i: (0, 0)),
                  pl.BlockSpec((1, cp), lambda i: (0, 0)),
                  pl.BlockSpec((1, cp), lambda i: (0, 0))],
        out_specs=pl.BlockSpec((cout, tm), lambda i: (0, i)),
        compiler_params=pltpu.CompilerParams(
            dimension_semantics=("parallel",),
            vmem_limit_bytes=VMEM_LIMIT),
    )(a_p, w_p, scale, shift)

    out_cm = out_t[:, :m]                                   # (Cout, M)
    return jnp.transpose(out_cm.reshape(cout, n, ho, wo), (1, 0, 2, 3))


# ----------------------------------------------------------------------------- reference

def _reference(x_nchw, weight, bias, gamma, beta, pad, stride):
    # Reference uses the same bf16 conv operands (f32 accumulation) as the kernel.
    conv = lax.conv_general_dilated(
        x_nchw.astype(jnp.bfloat16), weight.astype(jnp.bfloat16),
        window_strides=(stride, stride), padding=[(pad, pad), (pad, pad)],
        dimension_numbers=("NCHW", "OIHW", "NCHW"),
        preferred_element_type=jnp.float32)
    conv = conv + bias.astype(jnp.float32).reshape(1, -1, 1, 1)
    mean = jnp.mean(conv, axis=(0, 2, 3), keepdims=True)
    var = jnp.mean((conv - mean) ** 2, axis=(0, 2, 3), keepdims=True)
    y = (conv - mean) * lax.rsqrt(var + EPS) * gamma.reshape(1, -1, 1, 1) \
        + beta.reshape(1, -1, 1, 1)
    return jnp.where(y > 0, y, NEG_SLOPE * y)


if __name__ == "__main__":
    # conv(x=4, y=8, z=3, p=1, s=1, b=True)
    N, Cin, H, W = 2, 4, 16, 16
    Cout, KZ, P, S = 8, 3, 1, 1

    key = jax.random.PRNGKey(0)
    kx, kw_, kb = jax.random.split(key, 3)
    x = jax.random.normal(kx, (N, Cin, H, W), dtype=jnp.float32)
    weight = jax.random.normal(kw_, (Cout, Cin, KZ, KZ), dtype=jnp.float32) * 0.1
    bias = jax.random.normal(kb, (Cout,), dtype=jnp.float32) * 0.1
    gamma = jnp.ones((Cout,), dtype=jnp.float32)   # BatchNorm2d default weight
    beta = jnp.zeros((Cout,), dtype=jnp.float32)   # BatchNorm2d default bias

    # 1) benchmark shape -> fused single-call fast path.
    out = jax.block_until_ready(
        conv_block_forward(x, weight, bias, gamma, beta, pad=P, stride=S))
    ref = jax.block_until_ready(_reference(x, weight, bias, gamma, beta, P, S))
    assert out.shape == ref.shape
    assert float(jnp.max(jnp.abs(out - ref))) < 2e-3

    # 2) force the general two-pass path (multi-tile, padded M, split stats grid).
    x2 = jax.random.normal(jax.random.PRNGKey(1), (2, Cin, 20, 20), dtype=jnp.float32)
    out2 = jax.block_until_ready(conv_block_forward(
        x2, weight, bias, gamma, beta, pad=P, stride=S,
        tile_m=256, force_path="two_pass"))
    ref2 = jax.block_until_ready(_reference(x2, weight, bias, gamma, beta, P, S))
    assert out2.shape == ref2.shape
    assert float(jnp.max(jnp.abs(out2 - ref2))) < 2e-3

    print("KERNEL_OK")
</pallas_src>

<mosaic_0001>
module attributes {stable_mosaic.version = 11 : i64} {
  func.func @_fused_kernel(%arg0: i32, %arg1: memref<512x36xbf16, #tpu.memory_space<vmem>>, %arg2: memref<36x128xbf16, #tpu.memory_space<vmem>>, %arg3: memref<1x128xf32, #tpu.memory_space<vmem>>, %arg4: memref<1x128xf32, #tpu.memory_space<vmem>>, %arg5: memref<8x512xf32, #tpu.memory_space<vmem>>) attributes {dimension_semantics = [#tpu.dimension_semantics<arbitrary>], iteration_bounds = array<i64: 1>, scalar_prefetch = 0 : i64, scratch_operands = 0 : i64, tpu.core_type = #tpu.core_type<tc>, window_params = [{pipeline_mode = #tpu.pipeline_mode<synchronous>, transform_indices = @transform_0, window_bounds = array<i64: 512, 36>}, {pipeline_mode = #tpu.pipeline_mode<synchronous>, transform_indices = @transform_1, window_bounds = array<i64: 36, 128>}, {pipeline_mode = #tpu.pipeline_mode<synchronous>, transform_indices = @transform_2, window_bounds = array<i64: 1, 128>}, {pipeline_mode = #tpu.pipeline_mode<synchronous>, transform_indices = @transform_3, window_bounds = array<i64: 1, 128>}, {pipeline_mode = #tpu.pipeline_mode<synchronous>, transform_indices = @transform_4, window_bounds = array<i64: 8, 512>}]} {
    %c0 = arith.constant 0 : index
    %c0_0 = arith.constant 0 : index
    %0 = vector.load %arg1[%c0, %c0_0] : memref<512x36xbf16, #tpu.memory_space<vmem>>, vector<512x36xbf16>
    %c0_1 = arith.constant 0 : index
    %c0_2 = arith.constant 0 : index
    %1 = vector.load %arg2[%c0_1, %c0_2] : memref<36x128xbf16, #tpu.memory_space<vmem>>, vector<36x128xbf16>
    %cst = arith.constant dense<0.000000e+00> : vector<512x128xf32>
    %2 = tpu.matmul %0, %1, %cst {dimension_numbers = #tpu.dot_dimension_numbers<[1], [0], [0], [1], [0, 0, 1, 1], [], []>} : vector<512x36xbf16>, vector<36x128xbf16>, vector<512x128xf32> -> vector<512x128xf32>
    %cst_3 = arith.constant dense<0.000000e+00> : vector<128xf32>
    %3 = vector.multi_reduction <add>, %2, %cst_3 [0] : vector<512x128xf32> to vector<128xf32>
    %4 = vector.shape_cast %3 : vector<128xf32> to vector<1x128xf32>
    %cst_4 = arith.constant 0.001953125 : f32
    %5 = vector.broadcast %cst_4 : f32 to vector<1x128xf32>
    %6 = arith.mulf %4, %5 : vector<1x128xf32>
    %7 = arith.mulf %2, %2 : vector<512x128xf32>
    %cst_5 = arith.constant dense<0.000000e+00> : vector<128xf32>
    %8 = vector.multi_reduction <add>, %7, %cst_5 [0] : vector<512x128xf32> to vector<128xf32>
    %9 = vector.shape_cast %8 : vector<128xf32> to vector<1x128xf32>
    %cst_6 = arith.constant 0.001953125 : f32
    %10 = vector.broadcast %cst_6 : f32 to vector<1x128xf32>
    %11 = arith.mulf %9, %10 : vector<1x128xf32>
    %12 = arith.mulf %6, %6 : vector<1x128xf32>
    %13 = arith.subf %11, %12 : vector<1x128xf32>
    %cst_7 = arith.constant 0.000000e+00 : f32
    %14 = vector.broadcast %cst_7 : f32 to vector<1x128xf32>
    %15 = arith.maximumf %13, %14 : vector<1x128xf32>
    %cst_8 = arith.constant 9.99999974E-6 : f32
    %16 = vector.broadcast %cst_8 : f32 to vector<1x128xf32>
    %17 = arith.addf %15, %16 : vector<1x128xf32>
    %18 = math.rsqrt %17 : vector<1x128xf32>
    %c0_9 = arith.constant 0 : index
    %c0_10 = arith.constant 0 : index
    %19 = vector.load %arg3[%c0_9, %c0_10] : memref<1x128xf32, #tpu.memory_space<vmem>>, vector<1x128xf32>
    %20 = arith.mulf %18, %19 : vector<1x128xf32>
    %c0_11 = arith.constant 0 : index
    %c0_12 = arith.constant 0 : index
    %21 = vector.load %arg4[%c0_11, %c0_12] : memref<1x128xf32, #tpu.memory_space<vmem>>, vector<1x128xf32>
    %22 = arith.mulf %6, %20 : vector<1x128xf32>
    %23 = arith.subf %21, %22 : vector<1x128xf32>
    %24 = vector.broadcast %20 : vector<1x128xf32> to vector<512x128xf32>
    %25 = arith.mulf %2, %24 : vector<512x128xf32>
    %26 = vector.broadcast %23 : vector<1x128xf32> to vector<512x128xf32>
    %27 = arith.addf %25, %26 : vector<512x128xf32>
    %cst_13 = arith.constant 0.000000e+00 : f32
    %28 = vector.broadcast %cst_13 : f32 to vector<512x128xf32>
    %29 = arith.cmpf ogt, %27, %28 : vector<512x128xf32>
    %cst_14 = arith.constant 3.000000e-01 : f32
    %30 = vector.broadcast %cst_14 : f32 to vector<512x128xf32>
    %31 = arith.mulf %30, %27 : vector<512x128xf32>
    %32 = arith.select %29, %27, %31 : vector<512x128xi1>, vector<512x128xf32>
    %33 = tpu.transpose %32, [1, 0] : vector<512x128xf32> -> vector<128x512xf32>
    %34 = vector.extract_strided_slice %33 {offsets = [0, 0], sizes = [8, 512], strides = [1, 1]} : vector<128x512xf32> to vector<8x512xf32>
    %c0_15 = arith.constant 0 : index
    %c0_16 = arith.constant 0 : index
    %35 = vector.load %arg5[%c0_15, %c0_16] : memref<8x512xf32, #tpu.memory_space<vmem>>, vector<8x512xf32>
    tpu.vector_store %arg5[%c0_15, %c0_16], %34 {strides = array<i32>} : memref<8x512xf32, #tpu.memory_space<vmem>>, vector<8x512xf32>,
    return
  }
  func.func @transform_0(%arg0: i32) -> (i32, i32) {
    %c0_i32 = arith.constant 0 : i32
    %c0_i32_0 = arith.constant 0 : i32
    %c0_i32_1 = arith.constant 0 : i32
    return %c0_i32, %c0_i32_0 : i32, i32
  }
  func.func @transform_1(%arg0: i32) -> (i32, i32) {
    %c0_i32 = arith.constant 0 : i32
    %c0_i32_0 = arith.constant 0 : i32
    %c0_i32_1 = arith.constant 0 : i32
    return %c0_i32, %c0_i32_0 : i32, i32
  }
  func.func @transform_2(%arg0: i32) -> (i32, i32) {
    %c0_i32 = arith.constant 0 : i32
    %c0_i32_0 = arith.constant 0 : i32
    %c0_i32_1 = arith.constant 0 : i32
    return %c0_i32, %c0_i32_0 : i32, i32
  }
  func.func @transform_3(%arg0: i32) -> (i32, i32) {
    %c0_i32 = arith.constant 0 : i32
    %c0_i32_0 = arith.constant 0 : i32
    %c0_i32_1 = arith.constant 0 : i32
    return %c0_i32, %c0_i32_0 : i32, i32
  }
  func.func @transform_4(%arg0: i32) -> (i32, i32) {
    %c0_i32 = arith.constant 0 : i32
    %c0_i32_0 = arith.constant 0 : i32
    %c0_i32_1 = arith.constant 0 : i32
    return %c0_i32, %c0_i32_0 : i32, i32
  }
}

</mosaic_0001>

<bundles_post_ra>
// kernel: conv_block_forward.1
= control target key start
LH: loop header
LB: loop body
LE: loop exit
PB: predicated region body
PF: predicated region fallthrough
CT: control target
= control target key end

     0   :  { %vm262_vm0 = vcmask 293888   ;;  %vm359_vm1 = vcmask 1041408   ;;  %s2531_s1 = inlined_call_operand.vmem [shape: bf16[36,128], index: 1, kind: input, shape index: {}]   ;;  %s2532_s0 = inlined_call_operand.vmem [shape: bf16[512,36], index: 0, kind: input, shape index: {}]   ;;  %s2533_s2 = inlined_call_operand.vmem [shape: f32[1,128], index: 2, kind: input, shape index: {}]   ;;  %s2534_s3 = inlined_call_operand.vmem [shape: f32[1,128], index: 3, kind: input, shape index: {}]   ;;  %s2535_s4 = inlined_call_operand.vmem [shape: f32[8,512], index: 4, kind: output, shape index: {}]  }
   0x1   :  { %v1512_v0 = vld [vmem:[%s2531_s1] sm:$0xff]   ;;  %v1513_v1 = vld [vmem:[%s2531_s1 + $0x8] sm:$0xff]   ;;  %v1514_v2 = vld [vmem:[%s2531_s1 + $0x10] ss:$0 sps:$4 sm:$0x33]  }
   0x2   :  { %1434 = vmatprep.subr.bf16.mxu0 %v1512_v0  ;;  %v1515_v3 = vld [vmem:[%s2532_s0] sm:$0xff]   ;;  %1504 = vmatprep.subr.bf16.mxu1 %v1512_v0  ;;  %v361_v4 = vsel %vm359_vm1, %v1514_v2, 0  ;;  %v1516_v5 = vld [vmem:[%s2532_s0 + $0x8] sm:$0xff]   ;;  %v1517_v6 = vld [vmem:[%s2532_s0 + $0x10] sm:$0xff]  }
   0x3   :  { %1435 = vmatpush3.bf16.msra.mxu0 %v1512_v0  ;;  %1507 = vmatpush3.bf16.msra.mxu1 %v1512_v0  ;;  %v1518_v7 = vld [vmem:[%s2532_s0 + $0x18] sm:$0xff]   ;;  %v1519_v8 = vld [vmem:[%s2532_s0 + $0x20] sm:$0xff]   ;;  %v1532_v10 = vld [vmem:[%s2532_s0 + $0x88] sm:$0xff]  }
   0x4   :  { %1436 = vmatprep.subr.bf16.mxu0 %v1513_v1  ;;  %1440 = vmatprep.mubr.msk.bf16.mxu0 %vm262_vm0, %v1515_v3  ;;  %v1531_v9 = vld [vmem:[%s2532_s0 + $0x80] sm:$0xff]   ;;  %v1533_v11 = vld [vmem:[%s2532_s0 + $0x90] sm:$0xff]   ;;  %v1520_v12 = vld [vmem:[%s2532_s0 + $0x28] sm:$0xff]  }
   0x5   :  { %1505 = vmatprep.subr.bf16.mxu1 %v1513_v1  ;;  %1472 = vmatprep.mubr.msk.bf16.mxu1 %vm262_vm0, %v1531_v9  ;;  %v1521_v13 = vld [vmem:[%s2532_s0 + $0x30] sm:$0xff]   ;;  %v1534_v14 = vld [vmem:[%s2532_s0 + $0x98] sm:$0xff]   ;;  %v1535_v15 = vld [vmem:[%s2532_s0 + $0xa0] sm:$0xff]  }
   0x6   :  { %v1522_v16 = vld [vmem:[%s2532_s0 + $0x38] sm:$0xff]   ;;  %v1536_v17 = vld [vmem:[%s2532_s0 + $0xa8] sm:$0xff]   ;;  %v1523_v18 = vld [vmem:[%s2532_s0 + $0x40] sm:$0xff]  }
   0x7   :  { %1437 = vmatpush3.bf16.msra.mxu0 %v1513_v1  ;;  %1508 = vmatpush3.bf16.msra.mxu1 %v1513_v1  ;;  %v1537_v19 = vld [vmem:[%s2532_s0 + $0xb0] sm:$0xff]   ;;  %v1524_v20 = vld [vmem:[%s2532_s0 + $0x48] sm:$0xff]   ;;  %v1538_v21 = vld [vmem:[%s2532_s0 + $0xb8] sm:$0xff]  }
   0x8   :  { %1510 = vmatprep.subr.msk.bf16.mxu0 %vm359_vm1, %v1514_v2  ;;  %1511 = vmatprep.subr.msk.bf16.mxu1 %vm359_vm1, %v1514_v2  ;;  %v1525_v22 = vld [vmem:[%s2532_s0 + $0x50] sm:$0xff]   ;;  %v1539_v23 = vld [vmem:[%s2532_s0 + $0xc0] sm:$0xff]   ;;  %v1526_v24 = vld [vmem:[%s2532_s0 + $0x58] sm:$0xff]  }
   0x9   :  { %v1540_v25 = vld [vmem:[%s2532_s0 + $0xc8] sm:$0xff]   ;;  %v1527_v26 = vld [vmem:[%s2532_s0 + $0x60] sm:$0xff]   ;;  %v1541_v27 = vld [vmem:[%s2532_s0 + $0xd0] sm:$0xff]  }
   0xa   :  { %v1528_v28 = vld [vmem:[%s2532_s0 + $0x68] sm:$0xff]   ;;  %v1542_v29 = vld [vmem:[%s2532_s0 + $0xd8] sm:$0xff]   ;;  %v1529_v30 = vld [vmem:[%s2532_s0 + $0x70] sm:$0xff]  }
   0xb   :  { %1439 = vmatpush3.bf16.msra.mxu0 %v361_v4  ;;  %1509 = vmatpush3.bf16.msra.mxu1 %v361_v4  ;;  %v1543_v31 = vld [vmem:[%s2532_s0 + $0xe0] sm:$0xff]   ;;  %v1530_v32 = vld [vmem:[%s2532_s0 + $0x78] sm:$0xff]   ;;  %v1544_v33 = vld [vmem:[%s2532_s0 + $0xe8] sm:$0xff]  }
   0xc   :  { %v1545_v34 = vld [vmem:[%s2532_s0 + $0xf0] sm:$0xff]   ;;  %v1546_v35 = vld [vmem:[%s2532_s0 + $0xf8] sm:$0xff]  }
   0xe   :  { %1441 = vmatmul.mubr.msk.bf16.vlgmr.msra.gmra.mrb[0].mxu0 %vm262_vm0, %v1516_v5  ;;  %1473 = vmatmul.mubr.msk.bf16.vlgmr.msra.gmra.mrb[0].mxu1 %vm262_vm0, %v1532_v10 }
   0xf   :  { %1444 = vmatprep.mubr.msk.bf16.mxu0 %vm262_vm0, %v1517_v6  ;;  %1476 = vmatprep.mubr.msk.bf16.mxu1 %vm262_vm0, %v1533_v11 }
  0x16   :  { %1445 = vmatmul.mubr.msk.bf16.gmra.mrb[4].mxu0 %vm262_vm0, %v1518_v7  ;;  %1477 = vmatmul.mubr.msk.bf16.gmra.mrb[4].mxu1 %vm262_vm0, %v1534_v14 }
  0x17   :  { %1448 = vmatprep.mubr.msk.bf16.mxu0 %vm262_vm0, %v1519_v8  ;;  %1480 = vmatprep.mubr.msk.bf16.mxu1 %vm262_vm0, %v1535_v15 }
  0x1e   :  { %1449 = vmatmul.mubr.msk.bf16.gmra.mrb[8].mxu0 %vm262_vm0, %v1520_v12  ;;  %1481 = vmatmul.mubr.msk.bf16.gmra.mrb[8].mxu1 %vm262_vm0, %v1536_v17 }
  0x1f   :  { %1452 = vmatprep.mubr.msk.bf16.mxu0 %vm262_vm0, %v1521_v13  ;;  %1484 = vmatprep.mubr.msk.bf16.mxu1 %vm262_vm0, %v1537_v19 }
  0x26   :  { %1453 = vmatmul.mubr.msk.bf16.gmra.mrb[12].mxu0 %vm262_vm0, %v1522_v16  ;;  %1485 = vmatmul.mubr.msk.bf16.gmra.mrb[12].mxu1 %vm262_vm0, %v1538_v21 }
  0x27   :  { %1456 = vmatprep.mubr.msk.bf16.mxu0 %vm262_vm0, %v1523_v18  ;;  %1488 = vmatprep.mubr.msk.bf16.mxu1 %vm262_vm0, %v1539_v23 }
  0x2e   :  { %1457 = vmatmul.mubr.msk.bf16.gmra.mrb[16].mxu0 %vm262_vm0, %v1524_v20  ;;  %1489 = vmatmul.mubr.msk.bf16.gmra.mrb[16].mxu1 %vm262_vm0, %v1540_v25 }
  0x2f   :  { %1460 = vmatprep.mubr.msk.bf16.mxu0 %vm262_vm0, %v1525_v22  ;;  %1492 = vmatprep.mubr.msk.bf16.mxu1 %vm262_vm0, %v1541_v27 }
  0x36   :  { %1461 = vmatmul.mubr.msk.bf16.gmra.mrb[20].mxu0 %vm262_vm0, %v1526_v24  ;;  %1493 = vmatmul.mubr.msk.bf16.gmra.mrb[20].mxu1 %vm262_vm0, %v1542_v29 }
  0x37   :  { %1464 = vmatprep.mubr.msk.bf16.mxu0 %vm262_vm0, %v1527_v26  ;;  %1496 = vmatprep.mubr.msk.bf16.mxu1 %vm262_vm0, %v1543_v31 }
  0x3e   :  { %1465 = vmatmul.mubr.msk.bf16.gmra.mrb[24].mxu0 %vm262_vm0, %v1528_v28  ;;  %1497 = vmatmul.mubr.msk.bf16.gmra.mrb[24].mxu1 %vm262_vm0, %v1544_v33 }
  0x3f   :  { %1468 = vmatprep.mubr.msk.bf16.mxu0 %vm262_vm0, %v1529_v30  ;;  %1500 = vmatprep.mubr.msk.bf16.mxu1 %vm262_vm0, %v1545_v34 }
  0x46   :  { %1469 = vmatmul.mubr.msk.bf16.gmra.mrb[28].mxu0 %vm262_vm0, %v1530_v32  ;;  %1501 = vmatmul.mubr.msk.bf16.gmra.mrb[28].mxu1 %vm262_vm0, %v1546_v35 }
  0xe1   :  { %v1711_v36 = vpop.f32.mrb[0].mxu0  ;;  %v1733_v50 = vpop.f32.mrb[0].mxu1 }
  0xe2   :  { %v1713_v37 = vpop.f32.mrb[1].mxu0  ;;  %v724_v43 = vmul.f32 %v1711_v36, %v1711_v36  ;;  %v1737_v52 = vpop.f32.mrb[1].mxu1 }
  0xe3   :  { %v1715_v38 = vpop.f32.mrb[2].mxu0  ;;  %v722_v40 = vmul.f32 %v1713_v37, %v1713_v37  ;;  %2562 = vst [vmem:[#allocation2_spill] sm:$0xff] %v1737_v52  ;;  %v1744_v57 = vpop.f32.mrb[2].mxu1 }
  0xe4   :  { %v1717_v39 = vpop.f32.mrb[3].mxu0  ;;  %v725_v46 = vmul.f32 %v1715_v38, %v1715_v38  ;;  %v1748_v59 = vpop.f32.mrb[3].mxu1 }
  0xe5   :  { %v652_v41 = vadd.f32 %v1717_v39, %v1713_v37  ;;  %v723_v42 = vmul.f32 %v1717_v39, %v1717_v39  ;;  %2563 = vst [vmem:[#allocation3_spill] sm:$0xff] %v1748_v59 }
  0xe7   :  { %v653_v44 = vadd.f32 %v1711_v36, %v652_v41  ;;  %v786_v45 = vadd.f32 %v723_v42, %v722_v40 }
  0xe9   :  { %v787_v47 = vadd.f32 %v786_v45, %v724_v43  ;;  %v1730_v48 = vpop.f32.mrb[4].mxu0  ;;  %v654_v49 = vadd.f32 %v1715_v38, %v653_v44  ;;  %v1761_v6 = vpop.f32.mrb[4].mxu1 }
  0xea   :  { %v1735_v51 = vpop.f32.mrb[5].mxu0  ;;  %v728_v63 = vmul.f32 %v1730_v48, %v1730_v48  ;;  %v1765_v8 = vpop.f32.mrb[5].mxu1 }
  0xeb   :  { %v655_v53 = vadd.f32 %v654_v49, %v1735_v51  ;;  %v726_v54 = vmul.f32 %v1735_v51, %v1735_v51  ;;  %v788_v55 = vadd.f32 %v787_v47, %v725_v46  ;;  %v1742_v56 = vpop.f32.mrb[6].mxu0  ;;  %v1772_v13 = vpop.f32.mrb[6].mxu1 }
  0xec   :  { %v1746_v58 = vpop.f32.mrb[7].mxu0  ;;  %v729_v2 = vmul.f32 %v1742_v56, %v1742_v56  ;;  %v1776_v15 = vpop.f32.mrb[7].mxu1 }
  0xed   :  { %v789_v60 = vadd.f32 %v788_v55, %v726_v54  ;;  %v656_v61 = vadd.f32 %v655_v53, %v1746_v58  ;;  %v727_v62 = vmul.f32 %v1746_v58, %v1746_v58 }
  0xef   :  { %v657_v0 = vadd.f32 %v1730_v48, %v656_v61  ;;  %v790_v1 = vadd.f32 %v789_v60, %v727_v62 }
  0xf1   :  { %v791_v3 = vadd.f32 %v790_v1, %v728_v63  ;;  %v1758_v4 = vpop.f32.mrb[8].mxu0  ;;  %v658_v5 = vadd.f32 %v1742_v56, %v657_v0  ;;  %v1789_v26 = vpop.f32.mrb[8].mxu1 }
  0xf2   :  { %v1763_v7 = vpop.f32.mrb[9].mxu0  ;;  %v732_v19 = vmul.f32 %v1758_v4, %v1758_v4  ;;  %v1793_v28 = vpop.f32.mrb[9].mxu1 }
  0xf3   :  { %v659_v9 = vadd.f32 %v658_v5, %v1763_v7  ;;  %v730_v10 = vmul.f32 %v1763_v7, %v1763_v7  ;;  %v792_v11 = vadd.f32 %v791_v3, %v729_v2  ;;  %v1770_v12 = vpop.f32.mrb[10].mxu0  ;;  %v1800_v33 = vpop.f32.mrb[10].mxu1 }
  0xf4   :  { %v1774_v14 = vpop.f32.mrb[11].mxu0  ;;  %v733_v22 = vmul.f32 %v1770_v12, %v1770_v12  ;;  %v1804_v35 = vpop.f32.mrb[11].mxu1 }
  0xf5   :  { %v793_v16 = vadd.f32 %v792_v11, %v730_v10  ;;  %v660_v17 = vadd.f32 %v659_v9, %v1774_v14  ;;  %v731_v18 = vmul.f32 %v1774_v14, %v1774_v14 }
  0xf7   :  { %v661_v20 = vadd.f32 %v1758_v4, %v660_v17  ;;  %v794_v21 = vadd.f32 %v793_v16, %v731_v18 }
  0xf9   :  { %v795_v23 = vadd.f32 %v794_v21, %v732_v19  ;;  %v1786_v24 = vpop.f32.mrb[12].mxu0  ;;  %v662_v25 = vadd.f32 %v1770_v12, %v661_v20  ;;  %v1817_v54 = vpop.f32.mrb[12].mxu1 }
  0xfa   :  { %v1791_v27 = vpop.f32.mrb[13].mxu0  ;;  %v736_v43 = vmul.f32 %v1786_v24, %v1786_v24  ;;  %v1821_v60 = vpop.f32.mrb[13].mxu1 }
  0xfb   :  { %v663_v29 = vadd.f32 %v662_v25, %v1791_v27  ;;  %v734_v30 = vmul.f32 %v1791_v27, %v1791_v27  ;;  %v796_v31 = vadd.f32 %v795_v23, %v733_v22  ;;  %v1798_v32 = vpop.f32.mrb[14].mxu0  ;;  %v1828_v1 = vpop.f32.mrb[14].mxu1 }
  0xfc   :  { %v1802_v34 = vpop.f32.mrb[15].mxu0  ;;  %v737_v46 = vmul.f32 %v1798_v32, %v1798_v32  ;;  %v1832_v3 = vpop.f32.mrb[15].mxu1 }
  0xfd   :  { %v797_v40 = vadd.f32 %v796_v31, %v734_v30  ;;  %v664_v41 = vadd.f32 %v663_v29, %v1802_v34  ;;  %v735_v42 = vmul.f32 %v1802_v34, %v1802_v34 }
  0xff   :  { %v665_v44 = vadd.f32 %v1786_v24, %v664_v41  ;;  %v798_v45 = vadd.f32 %v797_v40, %v735_v42 }
 0x101   :  { %v799_v47 = vadd.f32 %v798_v45, %v736_v43  ;;  %v1814_v49 = vpop.f32.mrb[16].mxu0  ;;  %v666_v53 = vadd.f32 %v1798_v32, %v665_v44  ;;  %v1845_v22 = vpop.f32.mrb[16].mxu1 }
 0x102   :  { %v1819_v55 = vpop.f32.mrb[17].mxu0  ;;  %v740_v11 = vmul.f32 %v1814_v49, %v1814_v49  ;;  %v1849_v25 = vpop.f32.mrb[17].mxu1 }
 0x103   :  { %v667_v61 = vadd.f32 %v666_v53, %v1819_v55  ;;  %v738_v62 = vmul.f32 %v1819_v55, %v1819_v55  ;;  %v800_v63 = vadd.f32 %v799_v47, %v737_v46  ;;  %v1826_v0 = vpop.f32.mrb[18].mxu0  ;;  %v1856_v41 = vpop.f32.mrb[18].mxu1 }
 0x104   :  { %2564 = vst [vmem:[#allocation4_spill] sm:$0xff] %v1826_v0  ;;  %v1830_v2 = vpop.f32.mrb[19].mxu0  ;;  %v741_v18 = vmul.f32 %v1826_v0, %v1826_v0  ;;  %v1860_v43 = vpop.f32.mrb[19].mxu1 }
 0x105   :  { %v801_v5 = vadd.f32 %v800_v63, %v738_v62  ;;  %v668_v9 = vadd.f32 %v667_v61, %v1830_v2  ;;  %v739_v10 = vmul.f32 %v1830_v2, %v1830_v2 }
 0x107   :  { %v669_v16 = vadd.f32 %v1814_v49, %v668_v9  ;;  %v802_v17 = vadd.f32 %v801_v5, %v739_v10 }
 0x109   :  { %v803_v19 = vadd.f32 %v802_v17, %v740_v11  ;;  %v1842_v20 = vpop.f32.mrb[20].mxu0  ;;  %v670_v21 = vadd.f32 %v1826_v0, %v669_v16  ;;  %v1873_v10 = vpop.f32.mrb[20].mxu1 }
 0x10a   :  { %2565 = vst [vmem:[#allocation5_spill] sm:$0xff] %v1842_v20  ;;  %v1847_v23 = vpop.f32.mrb[21].mxu0  ;;  %v744_v47 = vmul.f32 %v1842_v20, %v1842_v20  ;;  %2570 = vst [vmem:[#allocation10_spill] sm:$0xff] %v1873_v10  ;;  %v1877_v16 = vpop.f32.mrb[21].mxu1 }
 0x10b   :  { %2566 = vst [vmem:[#allocation6_spill] sm:$0xff] %v1847_v23  ;;  %v671_v29 = vadd.f32 %v670_v21, %v1847_v23  ;;  %v742_v30 = vmul.f32 %v1847_v23, %v1847_v23  ;;  %v804_v31 = vadd.f32 %v803_v19, %v741_v18  ;;  %v1854_v40 = vpop.f32.mrb[22].mxu0 }
 0x10c   :  { %2567 = vst [vmem:[#allocation7_spill] sm:$0xff] %v1854_v40  ;;  %v1858_v42 = vpop.f32.mrb[23].mxu0  ;;  %v745_v62 = vmul.f32 %v1854_v40, %v1854_v40 }
 0x10d   :  { %2568 = vst [vmem:[#allocation8_spill] sm:$0xff] %v1858_v42  ;;  %v805_v44 = vadd.f32 %v804_v31, %v742_v30  ;;  %v672_v45 = vadd.f32 %v671_v29, %v1858_v42  ;;  %v743_v46 = vmul.f32 %v1858_v42, %v1858_v42  ;;  %v1884_v29 = vpop.f32.mrb[22].mxu1 }
 0x10e   :  { %2573 = vst [vmem:[#allocation13_spill] sm:$0xff] %v1884_v29  ;;  %v1888_v31 = vpop.f32.mrb[23].mxu1 }
 0x10f   :  { %v673_v53 = vadd.f32 %v1842_v20, %v672_v45  ;;  %v806_v61 = vadd.f32 %v805_v44, %v743_v46  ;;  %2575 = vst [vmem:[#allocation15_spill] sm:$0xff] %v1888_v31 }
 0x111   :  { %v807_v63 = vadd.f32 %v806_v61, %v744_v47  ;;  %v1870_v5 = vpop.f32.mrb[24].mxu0  ;;  %v674_v9 = vadd.f32 %v1854_v40, %v673_v53 }
 0x112   :  { %2569 = vst [vmem:[#allocation9_spill] sm:$0xff] %v1870_v5  ;;  %v1875_v11 = vpop.f32.mrb[25].mxu0  ;;  %v748_v47 = vmul.f32 %v1870_v5, %v1870_v5 }
 0x113   :  { %2571 = vst [vmem:[#allocation11_spill] sm:$0xff] %v1875_v11  ;;  %v675_v17 = vadd.f32 %v674_v9, %v1875_v11  ;;  %v746_v18 = vmul.f32 %v1875_v11, %v1875_v11  ;;  %v808_v19 = vadd.f32 %v807_v63, %v745_v62  ;;  %v1882_v21 = vpop.f32.mrb[26].mxu0 }
 0x114   :  { %2572 = vst [vmem:[#allocation12_spill] sm:$0xff] %v1882_v21  ;;  %v1886_v30 = vpop.f32.mrb[27].mxu0  ;;  %v749_v62 = vmul.f32 %v1882_v21, %v1882_v21 }
 0x115   :  { %2574 = vst [vmem:[#allocation14_spill] sm:$0xff] %v1886_v30  ;;  %v809_v44 = vadd.f32 %v808_v19, %v746_v18  ;;  %v676_v45 = vadd.f32 %v675_v17, %v1886_v30  ;;  %v747_v46 = vmul.f32 %v1886_v30, %v1886_v30  ;;  %v1901_v18 = vpop.f32.mrb[24].mxu1 }
 0x116   :  { %2577 = vst [vmem:[#allocation17_spill] sm:$0xff] %v1901_v18  ;;  %v1905_v19 = vpop.f32.mrb[25].mxu1 }
 0x117   :  { %v677_v53 = vadd.f32 %v1870_v5, %v676_v45  ;;  %v810_v61 = vadd.f32 %v809_v44, %v747_v46  ;;  %2579 = vst [vmem:[#allocation19_spill] sm:$0xff] %v1905_v19  ;;  %v1912_v5 = vpop.f32.mrb[26].mxu1 }
 0x118   :  { %2581 = vst [vmem:[#allocation21_spill] sm:$0xff] %v1912_v5 }
 0x119   :  { %v811_v63 = vadd.f32 %v810_v61, %v748_v47  ;;  %v1898_v9 = vpop.f32.mrb[28].mxu0  ;;  %v678_v11 = vadd.f32 %v1882_v21, %v677_v53  ;;  %v1916_v61 = vpop.f32.mrb[27].mxu1 }
 0x11a   :  { %2576 = vst [vmem:[#allocation16_spill] sm:$0xff] %v1898_v9  ;;  %v1903_v17 = vpop.f32.mrb[29].mxu0  ;;  %2583 = vst [vmem:[#allocation23_spill] sm:$0xff] %v1916_v61 }
 0x11b   :  { %2578 = vst [vmem:[#allocation18_spill] sm:$0xff] %v1903_v17  ;;  %v679_v30 = vadd.f32 %v678_v11, %v1903_v17  ;;  %v750_v45 = vmul.f32 %v1903_v17, %v1903_v17  ;;  %v812_v44 = vadd.f32 %v811_v63, %v749_v62  ;;  %v1910_v46 = vpop.f32.mrb[30].mxu0  ;;  %v752_v11 = vmul.f32 %v1898_v9, %v1898_v9 }
 0x11c   :  { %2580 = vst [vmem:[#allocation20_spill] sm:$0xff] %v1910_v46  ;;  %v1914_v47 = vpop.f32.mrb[31].mxu0  ;;  %v753_v63 = vmul.f32 %v1910_v46, %v1910_v46 }
 0x11d   :  { %2582 = vst [vmem:[#allocation22_spill] sm:$0xff] %v1914_v47  ;;  %v813_v53 = vadd.f32 %v812_v44, %v750_v45  ;;  %v680_v21 = vadd.f32 %v679_v30, %v1914_v47  ;;  %v751_v40 = vmul.f32 %v1914_v47, %v1914_v47  ;;  %v754_v45 = vmul.f32 %v1737_v52, %v1737_v52  ;;  %v1929_v44 = vpop.f32.mrb[28].mxu1 }
 0x11e   :  { %2584 = vst [vmem:[#allocation24_spill] sm:$0xff] %v1929_v44  ;;  %v1931_v30 = vpop.f32.mrb[29].mxu1 }
 0x11f   :  { %v681_v17 = vadd.f32 %v1898_v9, %v680_v21  ;;  %v814_v62 = vadd.f32 %v813_v53, %v751_v40  ;;  %2585 = vst [vmem:[#allocation25_spill] sm:$0xff] %v1931_v30  ;;  %v1934_v0 = vpop.f32.mrb[30].mxu1  ;;  %v759_v9 = vmul.f32 %v1776_v15, %v1776_v15 }
 0x120   :  { %v1936_v21 = vpop.f32.mrb[31].mxu1 }
 0x121   :  { %v815_v20 = vadd.f32 %v814_v62, %v752_v11  ;;  %v682_v42 = vadd.f32 %v1910_v46, %v681_v17  ;;  %v755_v17 = vmul.f32 %v1748_v59, %v1748_v59  ;;  %v756_v11 = vmul.f32 %v1733_v50, %v1733_v50 }
 0x123   :  { %v683_v47 = vadd.f32 %v682_v42, %v1737_v52  ;;  %v816_v23 = vadd.f32 %v815_v20, %v753_v63  ;;  %v757_v42 = vmul.f32 %v1744_v57, %v1744_v57 }
 0x125   :  { %v817_v40 = vadd.f32 %v816_v23, %v754_v45  ;;  %v684_v53 = vadd.f32 %v683_v47, %v1748_v59  ;;  %v758_v23 = vmul.f32 %v1765_v8, %v1765_v8 }
 0x127   :  { %v685_v62 = vadd.f32 %v1733_v50, %v684_v53  ;;  %v818_v46 = vadd.f32 %v817_v40, %v755_v17  ;;  %v760_v40 = vmul.f32 %v1761_v6, %v1761_v6  ;;  %v761_v17 = vmul.f32 %v1772_v13, %v1772_v13 }
 0x129   :  { %v819_v20 = vadd.f32 %v818_v46, %v756_v11  ;;  %v686_v63 = vadd.f32 %v1744_v57, %v685_v62 }
 0x12b   :  { %v687_v47 = vadd.f32 %v686_v63, %v1765_v8  ;;  %v820_v45 = vadd.f32 %v819_v20, %v757_v42  ;;  %v762_v42 = vmul.f32 %v1793_v28, %v1793_v28 }
 0x12d   :  { %v821_v52 = vadd.f32 %v820_v45, %v758_v23  ;;  %v688_v59 = vadd.f32 %v687_v47, %v1776_v15  ;;  %v763_v45 = vmul.f32 %v1804_v35, %v1804_v35 }
 0x12f   :  { %v689_v53 = vadd.f32 %v1761_v6, %v688_v59  ;;  %v822_v46 = vadd.f32 %v821_v52, %v759_v9  ;;  %v764_v52 = vmul.f32 %v1789_v26, %v1789_v26 }
 0x131   :  { %v823_v11 = vadd.f32 %v822_v46, %v760_v40  ;;  %v690_v62 = vadd.f32 %v1772_v13, %v689_v53  ;;  %v765_v40 = vmul.f32 %v1800_v33, %v1800_v33 }
 0x133   :  { %v691_v20 = vadd.f32 %v690_v62, %v1793_v28  ;;  %v824_v63 = vadd.f32 %v823_v11, %v761_v17  ;;  %v766_v17 = vmul.f32 %v1821_v60, %v1821_v60 }
 0x135   :  { %v825_v23 = vadd.f32 %v824_v63, %v762_v42  ;;  %v692_v47 = vadd.f32 %v691_v20, %v1804_v35  ;;  %v767_v63 = vmul.f32 %v1832_v3, %v1832_v3 }
 0x137   :  { %v693_v59 = vadd.f32 %v1789_v26, %v692_v47  ;;  %v826_v9 = vadd.f32 %v825_v23, %v763_v45  ;;  %v768_v23 = vmul.f32 %v1817_v54, %v1817_v54 }
 0x139   :  { %v827_v53 = vadd.f32 %v826_v9, %v764_v52  ;;  %v694_v46 = vadd.f32 %v1800_v33, %v693_v59  ;;  %v769_v52 = vmul.f32 %v1828_v1, %v1828_v1 }
 0x13b   :  { %v695_v11 = vadd.f32 %v694_v46, %v1821_v60  ;;  %v828_v62 = vadd.f32 %v827_v53, %v765_v40  ;;  %v770_v40 = vmul.f32 %v1849_v25, %v1849_v25 }
 0x13d   :  { %v829_v42 = vadd.f32 %v828_v62, %v766_v17  ;;  %v696_v20 = vadd.f32 %v695_v11, %v1832_v3  ;;  %v771_v62 = vmul.f32 %v1860_v43, %v1860_v43 }
 0x13f   :  { %v697_v47 = vadd.f32 %v1817_v54, %v696_v20  ;;  %v830_v45 = vadd.f32 %v829_v42, %v767_v63  ;;  %v772_v42 = vmul.f32 %v1845_v22, %v1845_v22 }
 0x141   :  { %v831_v59 = vadd.f32 %v830_v45, %v768_v23  ;;  %v698_v9 = vadd.f32 %v1828_v1, %v697_v47  ;;  %v773_v23 = vmul.f32 %v1856_v41, %v1856_v41 }
 0x143   :  { %v699_v53 = vadd.f32 %v698_v9, %v1849_v25  ;;  %v832_v46 = vadd.f32 %v831_v59, %v769_v52  ;;  %v774_v52 = vmul.f32 %v1877_v16, %v1877_v16 }
 0x145   :  { %v833_v17 = vadd.f32 %v832_v46, %v770_v40  ;;  %v700_v11 = vadd.f32 %v699_v53, %v1860_v43  ;;  %v775_v46 = vmul.f32 %v1888_v31, %v1888_v31 }
 0x147   :  { %v701_v20 = vadd.f32 %v1845_v22, %v700_v11  ;;  %v834_v63 = vadd.f32 %v833_v17, %v771_v62  ;;  %v776_v17 = vmul.f32 %v1873_v10, %v1873_v10 }
 0x149   :  { %v835_v47 = vadd.f32 %v834_v63, %v772_v42  ;;  %v702_v45 = vadd.f32 %v1856_v41, %v701_v20  ;;  %v777_v42 = vmul.f32 %v1884_v29, %v1884_v29 }
 0x14b   :  { %v703_v59 = vadd.f32 %v702_v45, %v1877_v16  ;;  %v836_v9 = vadd.f32 %v835_v47, %v773_v23  ;;  %v778_v23 = vmul.f32 %v1905_v19, %v1905_v19 }
 0x14d   :  { %v837_v40 = vadd.f32 %v836_v9, %v774_v52  ;;  %v704_v53 = vadd.f32 %v703_v59, %v1888_v31  ;;  %v779_v9 = vmul.f32 %v1916_v61, %v1916_v61 }
 0x14f   :  { %v705_v11 = vadd.f32 %v1873_v10, %v704_v53  ;;  %v838_v62 = vadd.f32 %v837_v40, %v775_v46  ;;  %v780_v40 = vmul.f32 %v1901_v18, %v1901_v18 }
 0x151   :  { %v839_v20 = vadd.f32 %v838_v62, %v776_v17  ;;  %v706_v63 = vadd.f32 %v1884_v29, %v705_v11  ;;  %v781_v17 = vmul.f32 %v1912_v5, %v1912_v5 }
 0x153   :  { %v707_v47 = vadd.f32 %v706_v63, %v1905_v19  ;;  %v840_v45 = vadd.f32 %v839_v20, %v777_v42  ;;  %v782_v42 = vmul.f32 %v1931_v30, %v1931_v30 }
 0x155   :  { %v841_v52 = vadd.f32 %v840_v45, %v778_v23  ;;  %v708_v59 = vadd.f32 %v707_v47, %v1916_v61  ;;  %v783_v45 = vmul.f32 %v1936_v21, %v1936_v21 }
 0x157   :  { %v709_v53 = vadd.f32 %v1901_v18, %v708_v59  ;;  %v842_v46 = vadd.f32 %v841_v52, %v779_v9  ;;  %v784_v52 = vmul.f32 %v1929_v44, %v1929_v44 }
 0x159   :  { %v843_v11 = vadd.f32 %v842_v46, %v780_v40  ;;  %v710_v62 = vadd.f32 %v1912_v5, %v709_v53  ;;  %v785_v40 = vmul.f32 %v1934_v0, %v1934_v0 }
 0x15b   :  { %v711_v20 = vadd.f32 %v710_v62, %v1931_v30  ;;  %v844_v63 = vadd.f32 %v843_v11, %v781_v17 }
 0x15d   :  { %v845_v23 = vadd.f32 %v844_v63, %v782_v42  ;;  %v712_v47 = vadd.f32 %v711_v20, %v1936_v21 }
 0x15f   :  { %v713_v59 = vadd.f32 %v1929_v44, %v712_v47  ;;  %v846_v9 = vadd.f32 %v845_v23, %v783_v45 }
 0x161   :  { %v714_v53 = vadd.f32 %v1934_v0, %v713_v59  ;;  %v847_v46 = vadd.f32 %v846_v9, %v784_v52  ;;  %v866_v52 = vlaneseq }
 0x163   :  { %v715_v62 = vrot.slane %v714_v53, 4  ;;  %v848_v17 = vadd.f32 %v847_v46, %v785_v40  ;;  %v867_v9 = vshrl.u32 %v866_v52, 7  ;;  %v861_v40 = vld [vmem:[%s2533_s2] sm:$0x1] }
 0x164   :  { %v2597_v52 = vld [vmem:[#allocation14_spill] sm:$0xff] }
 0x165   :  { %v716_v11 = vadd.f32 %v715_v62, %v714_v53  ;;  %v849_v42 = vrot.slane %v848_v17, 4  ;;  %v868_v53 = vsub.s32 0, %v867_v9 }
 0x167   :  { %v717_v20 = vrot.slane %v716_v11, 2  ;;  %v850_v63 = vadd.f32 %v849_v42, %v848_v17 }
 0x169   :  { %v718_v30 = vadd.f32 %v717_v20, %v716_v11  ;;  %v851_v5 = vrot.slane %v850_v63, 2 }
 0x16b   :  { %v719_v18 = vrot.slane %v718_v30, 1  ;;  %v852_v61 = vadd.f32 %v851_v5, %v850_v63  ;;  %v863_v5 = vld [vmem:[%s2534_s3] sm:$0x1] }
 0x16d   :  { %v720_v19 = vadd.f32 %v719_v18, %v718_v30  ;;  %v853_v29 = vrot.slane %v852_v61, 1 }
 0x16f   :  { %v721_v47 = vmul.f32 0.001953125, %v720_v19  ;;  %v854_v23 = vadd.f32 %v853_v29, %v852_v61 }
 0x171   :  { %v855_v45 = vmul.f32 0.001953125, %v854_v23  ;;  %v856_v44 = vmul.f32 %v721_v47, %v721_v47  ;;  %v2595_v23 = vld [vmem:[#allocation7_spill] sm:$0xff] }
 0x173   :  { %v857_v10 = vsub.f32 %v855_v45, %v856_v44  ;;  %v2596_v45 = vld [vmem:[#allocation11_spill] sm:$0xff] }
 0x175   :  { %v858_v31 = vmax.f32 %v857_v10, 0.0 }
 0x177   :  { %v859_v59 = vadd.f32 1e-05, %v858_v31 }
 0x179   :  { %1547 = vrsqrt.f32 %v859_v59 }
 0x183   :  { %v1548_v46 = vpop.eup %1547 }
 0x184   :  { %v862_v62 = vmul.f32 %v1548_v46, %v861_v40  ;;  %v2598_v40 = vld [vmem:[#allocation9_spill] sm:$0xff]  ;;  %v2599_v46 = vld [vmem:[#allocation12_spill] sm:$0xff] }
 0x186   :  { %v864_v29 = vmul.f32 %v862_v62, %v721_v47  ;;  %v2037_v18 = vrot.slane %v862_v62, %v868_v53 }
 0x188   :  { %v865_v19 = vsub.f32 %v863_v5, %v864_v29  ;;  %v931_v10 = vmul.f32 %v2037_v18, %v1936_v21  ;;  %v2043_v31 = vmul.f32 %v2037_v18, %v1713_v37  ;;  %v2047_v61 = vmul.f32 %v2037_v18, %v1717_v39  ;;  %v2600_v5 = vld [vmem:[#allocation18_spill] sm:$0xff] }
 0x189   :  { %v2051_v44 = vmul.f32 %v1711_v36, %v2037_v18  ;;  %v2055_v30 = vmul.f32 %v1715_v38, %v2037_v18  ;;  %v2059_v17 = vmul.f32 %v2037_v18, %v1735_v51  ;;  %v2063_v37 = vmul.f32 %v2037_v18, %v1746_v58 }
 0x18a   :  { %v2065_v21 = vrot.slane %v865_v19, %v868_v53  ;;  %v2069_v39 = vmul.f32 %v1730_v48, %v2037_v18  ;;  %v2073_v36 = vmul.f32 %v1742_v56, %v2037_v18  ;;  %v2077_v38 = vmul.f32 %v2037_v18, %v1763_v7  ;;  %v2602_v19 = vld [vmem:[#allocation22_spill] sm:$0xff] }
 0x18b   :  { %v2081_v51 = vmul.f32 %v2037_v18, %v1774_v14  ;;  %v2085_v58 = vmul.f32 %v1758_v4, %v2037_v18  ;;  %v2089_v48 = vmul.f32 %v1770_v12, %v2037_v18  ;;  %v2093_v56 = vmul.f32 %v2037_v18, %v1791_v27 }
 0x18c   :  { %v2096_v11 = vadd.f32 %v2065_v21, %v931_v10  ;;  %v2100_v7 = vmul.f32 %v2037_v18, %v1802_v34  ;;  %v2104_v14 = vmul.f32 %v1786_v24, %v2037_v18  ;;  %v2108_v4 = vmul.f32 %v1798_v32, %v2037_v18  ;;  %v2591_v34 = vld [vmem:[#allocation4_spill] sm:$0xff]  ;;  %v2592_v24 = vld [vmem:[#allocation6_spill] sm:$0xff] }
 0x18d   :  { %2586 = vst [vmem:[#allocation26_spill] sm:$0xff] %v2093_v56  ;;  %v886_v12 = vmul.f32 %v2037_v18, %v1819_v55  ;;  %v2114_v27 = vmul.f32 %v2037_v18, %v1830_v2  ;;  %v2118_v42 = vmul.f32 %v1814_v49, %v2037_v18  ;;  %v2122_v20 = vmul.f32 %v2591_v34, %v2037_v18  ;;  %v2593_v32 = vld [vmem:[#allocation8_spill] sm:$0xff]  ;;  %v2594_v55 = vld [vmem:[#allocation5_spill] sm:$0xff] }
 0x18e   :  { %2587 = vst [vmem:[#allocation27_spill] sm:$0xff] %v2096_v11  ;;  %2588 = vst [vmem:[#allocation28_spill] sm:$0xff] %v2100_v7  ;;  %v2126_v63 = vmul.f32 %v2037_v18, %v2592_v24  ;;  %v2130_v47 = vmul.f32 %v2037_v18, %v2593_v32  ;;  %v2134_v2 = vmul.f32 %v2594_v55, %v2037_v18  ;;  %v2603_v34 = vld [vmem:[#allocation16_spill] sm:$0xff]  ;;  %v2618_v7 = vld [vmem:[#allocation25_spill] sm:$0xff] }
 0x18f   :  { %2589 = vst [vmem:[#allocation29_spill] sm:$0xff] %v2104_v14  ;;  %2590 = vst [vmem:[#allocation30_spill] sm:$0xff] %v2108_v4  ;;  %v2138_v49 = vmul.f32 %v2595_v23, %v2037_v18  ;;  %v2142_v59 = vmul.f32 %v2037_v18, %v2596_v45  ;;  %v2146_v9 = vmul.f32 %v2037_v18, %v2597_v52  ;;  %v2605_v32 = vld [vmem:[#allocation20_spill] sm:$0xff]  ;;  %v2607_v23 = vld [vmem:[#allocation2_spill] sm:$0xff] }
 0x190   :  { %v2150_v53 = vmul.f32 %v2598_v40, %v2037_v18  ;;  %v2154_v62 = vmul.f32 %v2599_v46, %v2037_v18  ;;  %v2158_v29 = vmul.f32 %v2037_v18, %v2600_v5  ;;  %v899_v10 = vmul.f32 %v2037_v18, %v2602_v19  ;;  %v2609_v52 = vld [vmem:[#allocation3_spill] sm:$0xff] }
 0x191   :  { %v2164_v24 = vmul.f32 %v2603_v34, %v2037_v18  ;;  %v2168_v55 = vmul.f32 %v2605_v32, %v2037_v18  ;;  %v2172_v45 = vmul.f32 %v2037_v18, %v2607_v23  ;;  %v903_v40 = vmul.f32 %v2037_v18, %v2609_v52  ;;  %v2614_v4 = vld [vmem:[#allocation19_spill] sm:$0xff] }
 0x192   :  { %2601 = vst [vmem:[#allocation4_spill] sm:$0xff] %v2158_v29  ;;  %v904_v46 = vmul.f32 %v1733_v50, %v2037_v18  ;;  %v905_v5 = vmul.f32 %v1744_v57, %v2037_v18  ;;  %v906_v19 = vmul.f32 %v2037_v18, %v1765_v8  ;;  %v907_v34 = vmul.f32 %v2037_v18, %v1776_v15 }
 0x193   :  { %2604 = vst [vmem:[#allocation6_spill] sm:$0xff] %v2164_v24  ;;  %2606 = vst [vmem:[#allocation8_spill] sm:$0xff] %v2168_v55  ;;  %v908_v32 = vmul.f32 %v1761_v6, %v2037_v18  ;;  %v909_v23 = vmul.f32 %v1772_v13, %v2037_v18  ;;  %v910_v52 = vmul.f32 %v2037_v18, %v1793_v28  ;;  %v2615_v55 = vld [vmem:[#allocation23_spill] sm:$0xff] }
 0x194   :  { %2608 = vst [vmem:[#allocation5_spill] sm:$0xff] %v2172_v45  ;;  %v911_v50 = vmul.f32 %v2037_v18, %v1804_v35  ;;  %v912_v57 = vmul.f32 %v1789_v26, %v2037_v18  ;;  %v913_v8 = vmul.f32 %v1800_v33, %v2037_v18  ;;  %v914_v15 = vmul.f32 %v2037_v18, %v1821_v60 }
 0x195   :  { %v915_v6 = vmul.f32 %v2037_v18, %v1832_v3  ;;  %v916_v13 = vmul.f32 %v1817_v54, %v2037_v18  ;;  %v917_v28 = vmul.f32 %v1828_v1, %v2037_v18  ;;  %v2206_v35 = vmul.f32 %v2037_v18, %v1849_v25  ;;  %v2611_v54 = vld [vmem:[#allocation15_spill] sm:$0xff]  ;;  %v2612_v1 = vld [vmem:[#allocation10_spill] sm:$0xff]  ;;  %v2613_v25 = vld [vmem:[#allocation13_spill] sm:$0xff] }
 0x196   :  { %v919_v26 = vmul.f32 %v2037_v18, %v1860_v43  ;;  %v920_v33 = vmul.f32 %v1845_v22, %v2037_v18  ;;  %v921_v60 = vmul.f32 %v1856_v41, %v2037_v18  ;;  %v922_v3 = vmul.f32 %v2037_v18, %v1877_v16  ;;  %v2616_v41 = vld [vmem:[#allocation17_spill] sm:$0xff] }
 0x197   :  { %2610 = vst [vmem:[#allocation7_spill] sm:$0xff] %v2206_v35  ;;  %v923_v11 = vmul.f32 %v2037_v18, %v2611_v54  ;;  %v924_v45 = vmul.f32 %v2612_v1, %v2037_v18  ;;  %v925_v35 = vmul.f32 %v2613_v25, %v2037_v18  ;;  %v926_v43 = vmul.f32 %v2037_v18, %v2614_v4  ;;  %v2617_v16 = vld [vmem:[#allocation21_spill] sm:$0xff]  ;;  %v2619_v1 = vld [vmem:[#allocation24_spill] sm:$0xff] }
 0x198   :  { %v927_v22 = vmul.f32 %v2037_v18, %v2615_v55  ;;  %v928_v14 = vmul.f32 %v2616_v41, %v2037_v18  ;;  %v929_v24 = vmul.f32 %v2617_v16, %v2037_v18  ;;  %v930_v54 = vmul.f32 %v2037_v18, %v2618_v7 }
 0x199   :  { %v932_v56 = vmul.f32 %v2619_v1, %v2037_v18  ;;  %v933_v25 = vmul.f32 %v1934_v0, %v2037_v18  ;;  %v956_v4 = vadd.f32 %v2065_v21, %v886_v12  ;;  %v2238_v29 = vadd.f32 %v2065_v21, %v899_v10 }
 0x19a   :  { %v2241_v55 = vadd.f32 %v2065_v21, %v903_v40  ;;  %v2244_v41 = vadd.f32 %v2065_v21, %v904_v46  ;;  %v2247_v16 = vadd.f32 %v2065_v21, %v905_v5  ;;  %v2250_v1 = vadd.f32 %v2065_v21, %v906_v19 }
 0x19b   :  { %vm1020_vm2 = vcmp.gt.f32.partialorder %v956_v4, 0.0  ;;  %v1084_v7 = vmul.f32 0.3, %v956_v4  ;;  %v2253_v0 = vadd.f32 %v2065_v21, %v907_v34  ;;  %v2256_v18 = vadd.f32 %v2065_v21, %v908_v32 }
 0x19c   :  { %v2259_v12 = vadd.f32 %v2065_v21, %v909_v23  ;;  %v2262_v10 = vadd.f32 %v2065_v21, %v910_v52  ;;  %v2265_v40 = vadd.f32 %v2065_v21, %v911_v50  ;;  %v2268_v5 = vadd.f32 %v2065_v21, %v912_v57 }
 0x19d   :  { %v1148_v46 = vsel %vm1020_vm2, %v956_v4, %v1084_v7  ;;  %v2271_v19 = vadd.f32 %v2065_v21, %v913_v8  ;;  %v2274_v34 = vadd.f32 %v2065_v21, %v914_v15  ;;  %v2277_v32 = vadd.f32 %v2065_v21, %v915_v6 }
 0x19e   :  { %1228 = vxpose.xlu1.b32.start [1/16] (narrow) %v1148_v46, 8  ;;  %v2280_v23 = vadd.f32 %v2065_v21, %v916_v13  ;;  %v2283_v52 = vadd.f32 %v2065_v21, %v917_v28  ;;  %v2286_v50 = vadd.f32 %v2065_v21, %v919_v26  ;;  %v2289_v57 = vadd.f32 %v2065_v21, %v920_v33 }
 0x19f   :  { %v2292_v8 = vadd.f32 %v2065_v21, %v921_v60  ;;  %v2295_v15 = vadd.f32 %v2065_v21, %v922_v3  ;;  %v2298_v6 = vadd.f32 %v2065_v21, %v923_v11  ;;  %v2301_v13 = vadd.f32 %v2065_v21, %v924_v45 }
 0x1a0   :  { %2620 = vst [vmem:[#allocation11_spill] sm:$0xff] %v2283_v52  ;;  %v2304_v28 = vadd.f32 %v2065_v21, %v925_v35  ;;  %v2307_v26 = vadd.f32 %v2065_v21, %v926_v43  ;;  %v2310_v33 = vadd.f32 %v2065_v21, %v927_v22  ;;  %v2313_v60 = vadd.f32 %v2065_v21, %v928_v14 }
 0x1a1   :  { %v2316_v3 = vadd.f32 %v2065_v21, %v929_v24  ;;  %v2319_v11 = vadd.f32 %v2065_v21, %v930_v54  ;;  %v2322_v45 = vadd.f32 %v2065_v21, %v932_v56  ;;  %v2325_v35 = vadd.f32 %v2065_v21, %v933_v25 }
 0x1a2   :  { %v940_v43 = vadd.f32 %v2065_v21, %v2043_v31  ;;  %v957_v22 = vadd.f32 %v2065_v21, %v2114_v27  ;;  %v941_v14 = vadd.f32 %v2065_v21, %v2047_v61  ;;  %v958_v24 = vadd.f32 %v2065_v21, %v2118_v42 }
 0x1a3   :  { %v942_v54 = vadd.f32 %v2065_v21, %v2051_v44  ;;  %v959_v56 = vadd.f32 %v2065_v21, %v2122_v20  ;;  %v943_v25 = vadd.f32 %v2065_v21, %v2055_v30  ;;  %v960_v44 = vadd.f32 %v2065_v21, %v2126_v63 }
 0x1a4   :  { %vm1004_vm3 = vcmp.gt.f32.partialorder %v940_v43, 0.0  ;;  %v1068_v31 = vmul.f32 0.3, %v940_v43  ;;  %vm1021_vm4 = vcmp.gt.f32.partialorder %v957_v22, 0.0  ;;  %v1085_v4 = vmul.f32 0.3, %v957_v22 }
 0x1a5   :  { %v1069_v46 = vmul.f32 0.3, %v941_v14  ;;  %v1086_v61 = vmul.f32 0.3, %v958_v24  ;;  %vm1005_vm5 = vcmp.gt.f32.partialorder %v941_v14, 0.0  ;;  %vm1022_vm6 = vcmp.gt.f32.partialorder %v958_v24, 0.0 }
 0x1a6   :  { %v1132_v27 = vsel %vm1004_vm3, %v940_v43, %v1068_v31  ;;  %v1149_v7 = vsel %vm1021_vm4, %v957_v22, %v1085_v4  ;;  %vm1006_vm7 = vcmp.gt.f32.partialorder %v942_v54, 0.0  ;;  %v1070_v42 = vmul.f32 0.3, %v942_v54 }
 0x1a7   :  { %1196 = vxpose.xlu0.b32.start [1/16] (narrow) %v1132_v27, 8  ;;  %1229 = vxpose.xlu1.b32.cont [2/16] (narrow) %v1149_v7, 8  ;;  %v944_v30 = vadd.f32 %v2065_v21, %v2059_v17  ;;  %v961_v20 = vadd.f32 %v2065_v21, %v2130_v47  ;;  %v945_v43 = vadd.f32 %v2065_v21, %v2063_v37  ;;  %v1087_v4 = vmul.f32 0.3, %v959_v56 }
 0x1a8   :  { %v1133_v22 = vsel %vm1005_vm5, %v941_v14, %v1069_v46  ;;  %v1150_v31 = vsel %vm1022_vm6, %v958_v24, %v1086_v61  ;;  %v962_v27 = vadd.f32 %v2065_v21, %v2134_v2  ;;  %vm1023_vm8 = vcmp.gt.f32.partialorder %v959_v56, 0.0 }
 0x1a9   :  { %v946_v63 = vadd.f32 %v2065_v21, %v2069_v39  ;;  %v1134_v7 = vsel %vm1006_vm7, %v942_v54, %v1070_v42  ;;  %v1071_v17 = vmul.f32 0.3, %v943_v25  ;;  %v1151_v52 = vsel %vm1023_vm8, %v959_v56, %v1087_v4  ;;  %v2622_v4 = vld [vmem:[#allocation26_spill] sm:$0xff] }
 0x1aa   :  { %vm1007_vm9 = vcmp.gt.f32.partialorder %v943_v25, 0.0  ;;  %v1088_v47 = vmul.f32 0.3, %v960_v44  ;;  %v963_v37 = vadd.f32 %v2065_v21, %v2138_v49  ;;  %vm1024_vm10 = vcmp.gt.f32.partialorder %v960_v44, 0.0 }
 0x1ab   :  { %1197 = vxpose.xlu0.b32.cont [2/16] (narrow) %v1133_v22, 8  ;;  %1230 = vxpose.xlu1.b32.cont [3/16] (narrow) %v1150_v31, 8  ;;  %v947_v2 = vadd.f32 %v2065_v21, %v2073_v36  ;;  %v964_v14 = vadd.f32 %v2065_v21, %v2142_v59  ;;  %v948_v39 = vadd.f32 %v2065_v21, %v2077_v38  ;;  %v1072_v56 = vmul.f32 0.3, %v944_v30  ;;  %v2621_v22 = vld [vmem:[#allocation4_spill] sm:$0xff] }
 0x1ac   :  { %v1135_v24 = vsel %vm1007_vm9, %v943_v25, %v1071_v17  ;;  %v1152_v54 = vsel %vm1024_vm10, %v960_v44, %v1088_v47  ;;  %v1089_v46 = vmul.f32 0.3, %v961_v20  ;;  %v965_v61 = vadd.f32 %v2065_v21, %v2146_v9  ;;  %v2624_v17 = vld [vmem:[#allocation6_spill] sm:$0xff] }
 0x1ad   :  { %vm1008_vm11 = vcmp.gt.f32.partialorder %v944_v30, 0.0  ;;  %vm1025_vm12 = vcmp.gt.f32.partialorder %v961_v20, 0.0  ;;  %v949_v36 = vadd.f32 %v2065_v21, %v2081_v51  ;;  %v966_v49 = vadd.f32 %v2065_v21, %v2150_v53 }
 0x1ae   :  { %vm1009_vm13 = vcmp.gt.f32.partialorder %v945_v43, 0.0  ;;  %v1073_v59 = vmul.f32 0.3, %v945_v43  ;;  %v950_v38 = vadd.f32 %v2065_v21, %v2085_v58  ;;  %v1136_v25 = vsel %vm1008_vm11, %v944_v30, %v1072_v56  ;;  %v2623_v30 = vld [vmem:[#allocation28_spill] sm:$0xff] }
 0x1af   :  { %1198 = vxpose.xlu0.b32.cont [3/16] (narrow) %v1134_v7, 8  ;;  %1231 = vxpose.xlu1.b32.cont [4/16] (narrow) %v1151_v52, 8  ;;  %v967_v52 = vadd.f32 %v2065_v21, %v2154_v62  ;;  %v1153_v9 = vsel %vm1025_vm12, %v961_v20, %v1089_v46  ;;  %v1090_v44 = vmul.f32 0.3, %v962_v27  ;;  %v951_v42 = vadd.f32 %v2065_v21, %v2089_v48  ;;  %v2626_v46 = vld [vmem:[#allocation8_spill] sm:$0xff] }
 0x1b0   :  { %vm1026_vm14 = vcmp.gt.f32.partialorder %v962_v27, 0.0  ;;  %vm1010_vm15 = vcmp.gt.f32.partialorder %v946_v63, 0.0  ;;  %v1137_v51 = vsel %vm1009_vm13, %v945_v43, %v1073_v59  ;;  %v1074_v53 = vmul.f32 0.3, %v946_v63  ;;  %v2625_v43 = vld [vmem:[#allocation29_spill] sm:$0xff] }
 0x1b1   :  { %v968_v31 = vadd.f32 %v2065_v21, %v2621_v22  ;;  %v952_v58 = vadd.f32 %v2065_v21, %v2622_v4  ;;  %v1154_v7 = vsel %vm1026_vm14, %v962_v27, %v1090_v44  ;;  %v1091_v62 = vmul.f32 0.3, %v963_v37  ;;  %v2628_v44 = vld [vmem:[#allocation7_spill] sm:$0xff] }
 0x1b2   :  { %v2379_v20 = vadd.f32 %v2065_v21, %v2623_v30  ;;  %v2383_v48 = vadd.f32 %v2065_v21, %v2624_v17  ;;  %vm1027_vm0 = vcmp.gt.f32.partialorder %v963_v37, 0.0  ;;  %v2387_v47 = vadd.f32 %v2065_v21, %v2625_v43 }
 0x1b3   :  { %1199 = vxpose.xlu0.b32.cont [4/16] (narrow) %v1135_v24, 8  ;;  %1232 = vxpose.xlu1.b32.cont [5/16] (narrow) %v1152_v54, 8  ;;  %v1138_v24 = vsel %vm1010_vm15, %v946_v63, %v1074_v53  ;;  %v1075_v54 = vmul.f32 0.3, %v947_v2  ;;  %v1155_v56 = vsel %vm1027_vm0, %v963_v37, %v1091_v62  ;;  %v1092_v27 = vmul.f32 0.3, %v964_v14 }
 0x1b4   :  { %v2391_v59 = vadd.f32 %v2065_v21, %v2626_v46  ;;  %vm1011_vm1 = vcmp.gt.f32.partialorder %v947_v2, 0.0  ;;  %vm1028_vm2 = vcmp.gt.f32.partialorder %v964_v14, 0.0  ;;  %v2629_v63 = vld [vmem:[#allocation5_spill] sm:$0xff]  ;;  %v1076_v4 = vmul.f32 0.3, %v948_v39 }
 0x1b5   :  { %v2403_v37 = vadd.f32 %v2065_v21, %v2629_v63  ;;  %v1139_v53 = vsel %vm1011_vm1, %v947_v2, %v1075_v54  ;;  %v1156_v22 = vsel %vm1028_vm2, %v964_v14, %v1092_v27  ;;  %vm1012_vm3 = vcmp.gt.f32.partialorder %v948_v39, 0.0 }
 0x1b6   :  { %vm1029_vm4 = vcmp.gt.f32.partialorder %v965_v61, 0.0  ;;  %v1140_v62 = vsel %vm1012_vm3, %v948_v39, %v1076_v4  ;;  %v1077_v17 = vmul.f32 0.3, %v949_v36  ;;  %v1094_v43 = vmul.f32 0.3, %v966_v49 }
 0x1b7   :  { %1200 = vxpose.xlu0.b32.cont [5/16] (narrow) %v1136_v25, 8  ;;  %1233 = vxpose.xlu1.b32.cont [6/16] (narrow) %v1153_v9, 8  ;;  %v2627_v25 = vld [vmem:[#allocation30_spill] sm:$0xff]  ;;  %vm1013_vm5 = vcmp.gt.f32.partialorder %v949_v36, 0.0  ;;  %vm1030_vm6 = vcmp.gt.f32.partialorder %v966_v49, 0.0  ;;  %vm1014_vm7 = vcmp.gt.f32.partialorder %v950_v38, 0.0 }
 0x1b8   :  { %v2395_v9 = vadd.f32 %v2065_v21, %v2627_v25  ;;  %v1095_v46 = vmul.f32 0.3, %v967_v52  ;;  %vm1031_vm8 = vcmp.gt.f32.partialorder %v967_v52, 0.0  ;;  %v1079_v54 = vmul.f32 0.3, %v951_v42 }
 0x1b9   :  { %v1096_v27 = vmul.f32 0.3, %v968_v31  ;;  %vm1015_vm9 = vcmp.gt.f32.partialorder %v951_v42, 0.0  ;;  %vm1032_vm10 = vcmp.gt.f32.partialorder %v968_v31, 0.0  ;;  %v1080_v25 = vmul.f32 0.3, %v952_v58 }
 0x1ba   :  { %v1159_v14 = vsel %vm1031_vm8, %v967_v52, %v1095_v46  ;;  %v1143_v39 = vsel %vm1015_vm9, %v951_v42, %v1079_v54  ;;  %vm1016_vm11 = vcmp.gt.f32.partialorder %v952_v58, 0.0  ;;  %vm1033_vm12 = vcmp.gt.f32.partialorder %v2238_v29, 0.0 }
 0x1bb   :  { %1201 = vxpose.xlu0.b32.cont [6/16] (narrow) %v1137_v51, 8  ;;  %1234 = vxpose.xlu1.b32.cont [7/16] (narrow) %v1154_v7, 8  ;;  %v2399_v51 = vadd.f32 %v2065_v21, %v2628_v44  ;;  %v1093_v7 = vmul.f32 0.3, %v965_v61  ;;  %v1078_v21 = vmul.f32 0.3, %v950_v38 }
 0x1bc   :  { %v1081_v52 = vmul.f32 0.3, %v2379_v20  ;;  %v1098_v44 = vmul.f32 0.3, %v2383_v48  ;;  %vm1017_vm13 = vcmp.gt.f32.partialorder %v2379_v20, 0.0  ;;  %vm1034_vm14 = vcmp.gt.f32.partialorder %v2383_v48, 0.0 }
 0x1bd   :  { %v1157_v30 = vsel %vm1029_vm4, %v965_v61, %v1093_v7  ;;  %v1142_v2 = vsel %vm1014_vm7, %v950_v38, %v1078_v21  ;;  %v1160_v61 = vsel %vm1032_vm10, %v968_v31, %v1096_v27  ;;  %v1082_v63 = vmul.f32 0.3, %v2387_v47 }
 0x1be   :  { %v1145_v42 = vsel %vm1017_vm13, %v2379_v20, %v1081_v52  ;;  %v1162_v31 = vsel %vm1034_vm14, %v2383_v48, %v1098_v44  ;;  %vm1018_vm15 = vcmp.gt.f32.partialorder %v2387_v47, 0.0  ;;  %vm1035_vm0 = vcmp.gt.f32.partialorder %v2391_v59, 0.0 }
 0x1bf   :  { %1202 = vxpose.xlu0.b32.cont [7/16] (narrow) %v1138_v24, 8  ;;  %1235 = vxpose.xlu1.b32.cont [8/16] (narrow) %v1155_v56, 8  ;;  %v1141_v24 = vsel %vm1013_vm5, %v949_v36, %v1077_v17  ;;  %v1158_v56 = vsel %vm1030_vm6, %v966_v49, %v1094_v43  ;;  %v1097_v36 = vmul.f32 0.3, %v2238_v29  ;;  %v1144_v49 = vsel %vm1016_vm11, %v952_v58, %v1080_v25 }
 0x1c0   :  { %v1099_v58 = vmul.f32 0.3, %v2391_v59  ;;  %v1116_v20 = vmul.f32 0.3, %v2399_v51  ;;  %vm1019_vm1 = vcmp.gt.f32.partialorder %v2395_v9, 0.0  ;;  %vm1052_vm2 = vcmp.gt.f32.partialorder %v2399_v51, 0.0 }
 0x1c1   :  { %v1161_v38 = vsel %vm1033_vm12, %v2238_v29, %v1097_v36  ;;  %v1146_v29 = vsel %vm1018_vm15, %v2387_v47, %v1082_v63  ;;  %v1100_v7 = vmul.f32 0.3, %v2403_v37  ;;  %v1117_v47 = vmul.f32 0.3, %v2286_v50 }
 0x1c2   :  { %v1180_v4 = vsel %vm1052_vm2, %v2399_v51, %v1116_v20  ;;  %vm1036_vm3 = vcmp.gt.f32.partialorder %v2403_v37, 0.0  ;;  %vm1053_vm4 = vcmp.gt.f32.partialorder %v2286_v50, 0.0  ;;  %vm1037_vm5 = vcmp.gt.f32.partialorder %v2241_v55, 0.0 }
 0x1c3   :  { %1203 = vxpose.xlu0.b32.cont [8/16] (narrow) %v1139_v53, 8  ;;  %1236 = vxpose.xlu1.b32.cont [9/16] (narrow) %v1156_v22, 8  ;;  %v1163_v53 = vsel %vm1035_vm0, %v2391_v59, %v1099_v58  ;;  %v1083_v22 = vmul.f32 0.3, %v2395_v9  ;;  %v1164_v59 = vsel %vm1036_vm3, %v2403_v37, %v1100_v7  ;;  %vm1054_vm6 = vcmp.gt.f32.partialorder %v2289_v57, 0.0 }
 0x1c4   :  { %v1102_v43 = vmul.f32 0.3, %v2244_v41  ;;  %v1119_v37 = vmul.f32 0.3, %v2292_v8  ;;  %vm1038_vm7 = vcmp.gt.f32.partialorder %v2244_v41, 0.0  ;;  %vm1055_vm8 = vcmp.gt.f32.partialorder %v2292_v8, 0.0 }
 0x1c5   :  { %v1147_v48 = vsel %vm1019_vm1, %v2395_v9, %v1083_v22  ;;  %v1118_v9 = vmul.f32 0.3, %v2289_v57  ;;  %vm1039_vm9 = vcmp.gt.f32.partialorder %v2247_v16, 0.0  ;;  %vm1056_vm10 = vcmp.gt.f32.partialorder %v2295_v15, 0.0 }
 0x1c6   :  { %v1104_v46 = vmul.f32 0.3, %v2250_v1  ;;  %vm1040_vm11 = vcmp.gt.f32.partialorder %v2250_v1, 0.0  ;;  %vm1057_vm12 = vcmp.gt.f32.partialorder %v2298_v6, 0.0  ;;  %vm1041_vm13 = vcmp.gt.f32.partialorder %v2253_v0, 0.0 }
 0x1c7   :  { %1204 = vxpose.xlu0.b32.cont [9/16] (narrow) %v1140_v62, 8  ;;  %1237 = vxpose.xlu1.b32.cont [10/16] (narrow) %v1157_v30, 8  ;;  %v1181_v62 = vsel %vm1053_vm4, %v2286_v50, %v1117_v47  ;;  %v1101_v30 = vmul.f32 0.3, %v2241_v55  ;;  %v1182_v17 = vsel %vm1054_vm6, %v2289_v57, %v1118_v9  ;;  %v1166_v50 = vsel %vm1038_vm7, %v2244_v41, %v1102_v43  ;;  %v2631_v47 = vld [vmem:[#allocation11_spill] sm:$0xff] }
 0x1c8   :  { %v1121_v41 = vmul.f32 0.3, %v2298_v6  ;;  %vm1058_vm14 = vcmp.gt.f32.partialorder %v2301_v13, 0.0  ;;  %v1106_v27 = vmul.f32 0.3, %v2256_v18  ;;  %vm1042_vm15 = vcmp.gt.f32.partialorder %v2256_v18, 0.0 }
 0x1c9   :  { %v1165_v51 = vsel %vm1037_vm5, %v2241_v55, %v1101_v30  ;;  %v1120_v55 = vmul.f32 0.3, %v2295_v15  ;;  %vm1059_vm0 = vcmp.gt.f32.partialorder %v2304_v28, 0.0  ;;  %vm1043_vm1 = vcmp.gt.f32.partialorder %v2259_v12, 0.0 }
 0x1ca   :  { %vm1060_vm2 = vcmp.gt.f32.partialorder %v2307_v26, 0.0  ;;  %v1108_v36 = vmul.f32 0.3, %v2262_v10  ;;  %vm1044_vm3 = vcmp.gt.f32.partialorder %v2262_v10, 0.0  ;;  %vm1061_vm4 = vcmp.gt.f32.partialorder %v2310_v33, 0.0 }
 0x1cb   :  { %1205 = vxpose.xlu0.b32.cont [10/16] (narrow) %v1141_v24, 8  ;;  %1238 = vxpose.xlu1.b32.cont [11/16] (narrow) %v1158_v56, 8  ;;  %v1183_v24 = vsel %vm1055_vm8, %v2292_v8, %v1119_v37  ;;  %v1103_v56 = vmul.f32 0.3, %v2247_v16  ;;  %v1184_v21 = vsel %vm1056_vm10, %v2295_v15, %v1120_v55  ;;  %v1168_v8 = vsel %vm1040_vm11, %v2250_v1, %v1104_v46 }
 0x1cc   :  { %v1123_v1 = vmul.f32 0.3, %v2304_v28  ;;  %vm1045_vm5 = vcmp.gt.f32.partialorder %v2265_v40, 0.0  ;;  %vm1062_vm6 = vcmp.gt.f32.partialorder %v2313_v60, 0.0  ;;  %v1110_v44 = vmul.f32 0.3, %v2268_v5 }
 0x1cd   :  { %v1167_v57 = vsel %vm1039_vm9, %v2247_v16, %v1103_v56  ;;  %v1122_v16 = vmul.f32 0.3, %v2301_v13  ;;  %vm1046_vm7 = vcmp.gt.f32.partialorder %v2268_v5, 0.0  ;;  %vm1063_vm8 = vcmp.gt.f32.partialorder %v2316_v3, 0.0 }
 0x1ce   :  { %vm1047_vm9 = vcmp.gt.f32.partialorder %v2271_v19, 0.0  ;;  %vm1064_vm10 = vcmp.gt.f32.partialorder %v2319_v11, 0.0  ;;  %v1112_v58 = vmul.f32 0.3, %v2274_v34  ;;  %vm1048_vm11 = vcmp.gt.f32.partialorder %v2274_v34, 0.0 }
 0x1cf   :  { %1206 = vxpose.xlu0.b32.cont [11/16] (narrow) %v1142_v2, 8  ;;  %1239 = vxpose.xlu1.b32.cont [12/16] (narrow) %v1159_v14, 8  ;;  %v1185_v2 = vsel %vm1057_vm12, %v2298_v6, %v1121_v41  ;;  %v1105_v14 = vmul.f32 0.3, %v2253_v0  ;;  %v1186_v54 = vsel %vm1058_vm14, %v2301_v13, %v1122_v16  ;;  %v1170_v6 = vsel %vm1042_vm15, %v2256_v18, %v1106_v27 }
 0x1d0   :  { %v1125_v18 = vmul.f32 0.3, %v2310_v33  ;;  %v1113_v22 = vmul.f32 0.3, %v2277_v32  ;;  %vm1066_vm14 = vcmp.gt.f32.partialorder %v2322_v45, 0.0  ;;  %vm1050_vm15 = vcmp.gt.f32.partialorder %v2280_v23, 0.0 }
 0x1d1   :  { %v1169_v15 = vsel %vm1041_vm13, %v2253_v0, %v1105_v14  ;;  %v1124_v0 = vmul.f32 0.3, %v2307_v26  ;;  %vm1049_vm13 = vcmp.gt.f32.partialorder %v2277_v32, 0.0 }
 0x1d3   :  { %1207 = vxpose.xlu0.b32.cont [12/16] (narrow) %v1143_v39, 8  ;;  %1240 = vxpose.xlu1.b32.cont [13/16] (narrow) %v1160_v61, 8  ;;  %v1187_v39 = vsel %vm1059_vm0, %v2304_v28, %v1123_v1  ;;  %v1107_v61 = vmul.f32 0.3, %v2259_v12  ;;  %v1188_v25 = vsel %vm1060_vm2, %v2307_v26, %v1124_v0  ;;  %v1172_v28 = vsel %vm1044_vm3, %v2262_v10, %v1108_v36 }
 0x1d4   :  { %v1127_v10 = vmul.f32 0.3, %v2316_v3  ;;  %vm1067_vm0 = vcmp.gt.f32.partialorder %v2325_v35, 0.0 }
 0x1d5   :  { %v1171_v13 = vsel %vm1043_vm1, %v2259_v12, %v1107_v61  ;;  %v1126_v12 = vmul.f32 0.3, %v2313_v60  ;;  %vm1051_vm1 = vcmp.gt.f32.partialorder %v2631_v47, 0.0 }
 0x1d7   :  { %1208 = vxpose.xlu0.b32.cont [13/16] (narrow) %v1144_v49, 8  ;;  %1241 = vxpose.xlu1.b32.cont [14/16] (narrow) %v1161_v38, 8  ;;  %v1189_v49 = vsel %vm1061_vm4, %v2310_v33, %v1125_v18  ;;  %v1109_v38 = vmul.f32 0.3, %v2265_v40  ;;  %v1190_v52 = vsel %vm1062_vm6, %v2313_v60, %v1126_v12  ;;  %v1174_v33 = vsel %vm1046_vm7, %v2268_v5, %v1110_v44 }
 0x1d9   :  { %v1173_v26 = vsel %vm1045_vm5, %v2265_v40, %v1109_v38  ;;  %v1128_v40 = vmul.f32 0.3, %v2319_v11 }
 0x1db   :  { %1209 = vxpose.xlu0.b32.cont [14/16] (narrow) %v1145_v42, 8  ;;  %1242 = vxpose.xlu1.b32.cont [15/16] (narrow) %v1162_v31, 8  ;;  %v1191_v42 = vsel %vm1063_vm8, %v2316_v3, %v1127_v10  ;;  %v1111_v31 = vmul.f32 0.3, %v2271_v19  ;;  %v1192_v63 = vsel %vm1064_vm10, %v2319_v11, %v1128_v40  ;;  %v1176_v3 = vsel %vm1048_vm11, %v2274_v34, %v1112_v58 }
 0x1dc   :  { %v1177_v11 = vsel %vm1049_vm13, %v2277_v32, %v1113_v22  ;;  %v1131_v34 = vmul.f32 0.3, %v2325_v35 }
 0x1dd   :  { %v1175_v60 = vsel %vm1047_vm9, %v2271_v19, %v1111_v31  ;;  %v1130_v19 = vmul.f32 0.3, %v2322_v45 }
 0x1de   :  { %v1195_v7 = vsel %vm1067_vm0, %v2325_v35, %v1131_v34 }
 0x1df   :  { %1210 = vxpose.xlu0.b32.cont [15/16] (narrow) %v1146_v29, 8  ;;  %1243 = vxpose.xlu1.b32.end [16/16] (narrow) %v1163_v53, 8  ;;  %v2630_v29 = vld [vmem:[#allocation27_spill] sm:$0xff]  ;;  %v1194_v20 = vsel %vm1066_vm14, %v2322_v45, %v1130_v19 }
 0x1e0   :  { %v1129_v5 = vmul.f32 0.3, %v2630_v29  ;;  %vm1065_vm12 = vcmp.gt.f32.partialorder %v2630_v29, 0.0 }
 0x1e2   :  { %v1193_v53 = vsel %vm1065_vm12, %v2630_v29, %v1129_v5 }
 0x1e3   :  { %1211 = vxpose.xlu0.b32.end [16/16] (narrow) %v1147_v48, 8  ;;  %1292 = vxpose.xlu1.b32.start [1/16] (narrow) %v1180_v4, 8  ;;  %v1114_v48 = vmul.f32 0.3, %v2280_v23 }
 0x1e5   :  { %v1178_v4 = vsel %vm1050_vm15, %v2280_v23, %v1114_v48 }
 0x1e7   :  { %1260 = vxpose.xlu0.b32.start [1/16] (narrow) %v1164_v59, 8  ;;  %1293 = vxpose.xlu1.b32.cont [2/16] (narrow) %v1181_v62, 8  ;;  %v1115_v59 = vmul.f32 0.3, %v2631_v47 }
 0x1e9   :  { %v1179_v32 = vsel %vm1051_vm1, %v2631_v47, %v1115_v59 }
 0x1eb   :  { %1261 = vxpose.xlu0.b32.cont [2/16] (narrow) %v1165_v51, 8  ;;  %1294 = vxpose.xlu1.b32.cont [3/16] (narrow) %v1182_v17, 8 }
 0x1ef   :  { %1262 = vxpose.xlu0.b32.cont [3/16] (narrow) %v1166_v50, 8  ;;  %1295 = vxpose.xlu1.b32.cont [4/16] (narrow) %v1183_v24, 8 }
 0x1f3   :  { %1263 = vxpose.xlu0.b32.cont [4/16] (narrow) %v1167_v57, 8  ;;  %1296 = vxpose.xlu1.b32.cont [5/16] (narrow) %v1184_v21, 8 }
 0x1f7   :  { %1264 = vxpose.xlu0.b32.cont [5/16] (narrow) %v1168_v8, 8  ;;  %1297 = vxpose.xlu1.b32.cont [6/16] (narrow) %v1185_v2, 8 }
 0x1fb   :  { %1265 = vxpose.xlu0.b32.cont [6/16] (narrow) %v1169_v15, 8  ;;  %1298 = vxpose.xlu1.b32.cont [7/16] (narrow) %v1186_v54, 8 }
 0x1ff   :  { %1266 = vxpose.xlu0.b32.cont [7/16] (narrow) %v1170_v6, 8  ;;  %1299 = vxpose.xlu1.b32.cont [8/16] (narrow) %v1187_v39, 8 }
 0x203   :  { %1267 = vxpose.xlu0.b32.cont [8/16] (narrow) %v1171_v13, 8  ;;  %1300 = vxpose.xlu1.b32.cont [9/16] (narrow) %v1188_v25, 8 }
 0x207   :  { %1268 = vxpose.xlu0.b32.cont [9/16] (narrow) %v1172_v28, 8  ;;  %1301 = vxpose.xlu1.b32.cont [10/16] (narrow) %v1189_v49, 8 }
 0x20b   :  { %1269 = vxpose.xlu0.b32.cont [10/16] (narrow) %v1173_v26, 8  ;;  %1302 = vxpose.xlu1.b32.cont [11/16] (narrow) %v1190_v52, 8 }
 0x20f   :  { %1270 = vxpose.xlu0.b32.cont [11/16] (narrow) %v1174_v33, 8  ;;  %1303 = vxpose.xlu1.b32.cont [12/16] (narrow) %v1191_v42, 8 }
 0x213   :  { %1271 = vxpose.xlu0.b32.cont [12/16] (narrow) %v1175_v60, 8  ;;  %1304 = vxpose.xlu1.b32.cont [13/16] (narrow) %v1192_v63, 8 }
 0x217   :  { %1272 = vxpose.xlu0.b32.cont [13/16] (narrow) %v1176_v3, 8  ;;  %1305 = vxpose.xlu1.b32.cont [14/16] (narrow) %v1193_v53, 8 }
 0x21b   :  { %1273 = vxpose.xlu0.b32.cont [14/16] (narrow) %v1177_v11, 8  ;;  %1306 = vxpose.xlu1.b32.cont [15/16] (narrow) %v1194_v20, 8 }
 0x21f   :  { %1274 = vxpose.xlu0.b32.cont [15/16] (narrow) %v1178_v4, 8  ;;  %1307 = vxpose.xlu1.b32.end [16/16] (narrow) %v1195_v7, 8 }
 0x223   :  { %1275 = vxpose.xlu0.b32.end [16/16] (narrow) %v1179_v32, 8  ;;  %v1244_v45 = vpop.trf.xlu1 }
 0x224   :  { %1325 = vst [vmem:[%s2535_s4 + $0x8] sm:$0xff] %v1244_v45 }
 0x227   :  { %v1212_v62 = vpop.trf.xlu0 }
 0x228   :  { %1324 = vst [vmem:[%s2535_s4] sm:$0xff] %v1212_v62 }
 0x263   :  { %v1308_v23 = vpop.trf.xlu1 }
 0x264   :  { %1327 = vst [vmem:[%s2535_s4 + $0x18] sm:$0xff] %v1308_v23 }
 0x267   :  { %v1276_v35 = vpop.trf.xlu0 }
 0x268   :  { %1326 = vst [vmem:[%s2535_s4 + $0x10] sm:$0xff] %v1276_v35 }

</bundles_post_ra>
